<compile_context>
chip_gen: v5e
topology: v5e:2x2
jax: 0.10.0
libtpu: 0.0.40
codegen_flags: <defaults>
</compile_context>

<pallas_src>
import functools

import numpy as np
import jax
import jax.numpy as jnp
from jax import lax
from jax.experimental import pallas as pl
from jax.experimental.pallas import tpu as pltpu


# ----------------------------- Fused Pallas kernel --------------------------

def _inverted_residual_kernel(*refs, W, stride, has_expand, use_res):
    """One image per grid step; (channels, flattened-spatial) layout throughout."""
    idx = 0
    x_ref = refs[idx]; idx += 1
    if has_expand:
        w1_ref, b1_ref = refs[idx], refs[idx + 1]; idx += 2
    wd_ref, b2_ref, m_ref, w3_ref, b3_ref = refs[idx:idx + 5]; idx += 5
    sel_ref = None
    if stride != 1:
        sel_ref = refs[idx]; idx += 1
    o_ref = refs[idx]

    hidden = wd_ref.shape[0]
    HW = m_ref.shape[1]                                 # H * W (lane axis)

    x = x_ref[0].astype(jnp.float32)                    # (inp, HW)

    # ---- stage 1: expand 1x1 (BN scale pre-folded) + bias + ReLU ----------
    if has_expand:
        e = jnp.dot(w1_ref[...], x, preferred_element_type=jnp.float32)
        e = jnp.maximum(e + b1_ref[...], 0.0)           # (hidden, HW)
    else:
        e = x                                           # hidden == inp

    # ---- stage 2: depthwise 3x3 (BN scale pre-folded) + bias + ReLU -------
    # Each tap is a lane shift of the flattened image (pltpu.roll -> XLU);
    # image borders are zeroed with precomputed per-tap masks, so no padded
    # halo scratch (and no scratch zeroing) is needed.
    acc = jnp.broadcast_to(b2_ref[...], (hidden, HW))   # bias folded into init
    for t in range(9):
        dh, dw = t // 3 - 1, t % 3 - 1
        shift = dh * W + dw
        win = pltpu.roll(e, (-shift) % HW, axis=1) if shift != 0 else e
        if dh != 0 or dw != 0:
            win = win * m_ref[t:t + 1, :]               # (1, HW) edge mask
        acc = acc + win * wd_ref[:, t:t + 1]            # per-channel tap weight
    d = jnp.maximum(acc, 0.0)                           # (hidden, HW)

    # stride 2: pick every other row/col via a constant 0/1 matmul (MXU).
    if stride != 1:
        d = jnp.dot(d, sel_ref[...], preferred_element_type=jnp.float32)

    # ---- stage 3: project 1x1 (BN scale pre-folded) + bias + residual -----
    y = jnp.dot(w3_ref[...], d, preferred_element_type=jnp.float32) + b3_ref[...]
    if use_res:
        y = y + x                                       # inp == oup, stride == 1
    o_ref[0] = y.astype(o_ref.dtype)                    # lane-dense store


# ----------------------------- Module wrapper --------------------------------

_BN_EPS = 1e-5


def fold_bn(gamma, beta, mean, var, eps=_BN_EPS):
    scale = gamma / jnp.sqrt(var + eps)
    return scale, beta - mean * scale


def _edge_masks(H, W):
    """(9, H*W) f32: mask[t, p] == 1 iff 3x3 tap t reads inside the image."""
    m = np.ones((9, H, W), np.float32)
    for t in range(9):
        dh, dw = t // 3 - 1, t % 3 - 1
        if dh < 0:
            m[t, 0, :] = 0.0
        if dh > 0:
            m[t, H - 1, :] = 0.0
        if dw < 0:
            m[t, :, 0] = 0.0
        if dw > 0:
            m[t, :, W - 1] = 0.0
    return m.reshape(9, H * W)


def _stride_select(H, W, Ho, Wo, stride):
    """(H*W, Ho*Wo) 0/1 matrix: full-res depthwise output -> strided output."""
    sel = np.zeros((H * W, Ho * Wo), np.float32)
    for q in range(Ho * Wo):
        io, jo = divmod(q, Wo)
        sel[(io * stride) * W + jo * stride, q] = 1.0
    return sel


@functools.partial(jax.jit, static_argnums=(2, 3, 4, 5))
def inverted_residual_forward(x_nchw, P, inp, oup, stride, expand_ratio):
    """InvertedResidual forward: NCHW in, NCHW out, single fused Pallas kernel."""
    hidden = int(round(inp * expand_ratio))
    has_expand = expand_ratio != 1
    use_res = (stride == 1) and (inp == oup)
    N, _, H, W = x_nchw.shape
    Ho = (H - 1) // stride + 1
    Wo = (W - 1) // stride + 1
    HW, HoWo = H * W, Ho * Wo

    # Lane-dense I/O: (N, C, H*W) -- flattened spatial on the 128-lane axis,
    # channels on sublanes.  Pure reshape (free), no transpose / pad passes.
    x_flat = x_nchw.reshape(N, inp, HW)

    # Fold BN scale into conv weights at trace time; only biases reach the kernel.
    args = [x_flat]
    in_specs = [pl.BlockSpec((1, inp, HW), lambda n: (n, 0, 0))]
    if has_expand:
        s1, c1 = fold_bn(P["g1"], P["b1"], P["m1"], P["v1"])
        w1 = (P["w1_pt"][:, :, 0, 0] * s1[:, None]).astype(jnp.float32)      # (hidden, inp)
        args += [w1, c1.reshape(hidden, 1).astype(jnp.float32)]
        in_specs += [pl.BlockSpec((hidden, inp), lambda n: (0, 0)),
                     pl.BlockSpec((hidden, 1), lambda n: (0, 0))]
    s2, c2 = fold_bn(P["g2"], P["b2"], P["m2"], P["v2"])
    wd = (P["wd_pt"].reshape(hidden, 9) * s2[:, None]).astype(jnp.float32)    # (hidden, 9)
    s3, c3 = fold_bn(P["g3"], P["b3"], P["m3"], P["v3"])
    w3 = (P["w3_pt"][:, :, 0, 0] * s3[:, None]).astype(jnp.float32)           # (oup, hidden)
    args += [wd, c2.reshape(hidden, 1).astype(jnp.float32),
             jnp.asarray(_edge_masks(H, W)), w3,
             c3.reshape(oup, 1).astype(jnp.float32)]
    in_specs += [pl.BlockSpec((hidden, 9), lambda n: (0, 0)),
                 pl.BlockSpec((hidden, 1), lambda n: (0, 0)),
                 pl.BlockSpec((9, HW), lambda n: (0, 0)),
                 pl.BlockSpec((oup, hidden), lambda n: (0, 0)),
                 pl.BlockSpec((oup, 1), lambda n: (0, 0))]
    if stride != 1:
        args += [jnp.asarray(_stride_select(H, W, Ho, Wo, stride))]
        in_specs += [pl.BlockSpec((HW, HoWo), lambda n: (0, 0))]

    kernel = functools.partial(_inverted_residual_kernel, W=W, stride=stride,
                               has_expand=has_expand, use_res=use_res)

    out_flat = pl.pallas_call(
        kernel,
        out_shape=jax.ShapeDtypeStruct((N, oup, HoWo), x_nchw.dtype),
        grid=(N,),
        in_specs=in_specs,
        out_specs=pl.BlockSpec((1, oup, HoWo), lambda n: (n, 0, 0)),
        compiler_params=pltpu.CompilerParams(
            dimension_semantics=("parallel",)),
    )(*args)

    return out_flat.reshape(N, oup, Ho, Wo)


# ----------------------------- Parameter init --------------------------------

def init_params(key, inp, oup, expand_ratio):
    hidden = int(round(inp * expand_ratio))
    k = jax.random.split(key, 15)
    P = {}
    if expand_ratio != 1:
        P["w1_pt"] = 0.1 * jax.random.normal(k[0], (hidden, inp, 1, 1), jnp.float32)
        P["g1"] = 1.0 + 0.1 * jax.random.normal(k[1], (hidden,), jnp.float32)
        P["b1"] = 0.1 * jax.random.normal(k[2], (hidden,), jnp.float32)
        P["m1"] = 0.1 * jax.random.normal(k[3], (hidden,), jnp.float32)
        P["v1"] = 0.5 + jnp.abs(jax.random.normal(k[4], (hidden,), jnp.float32))
    P["wd_pt"] = 0.1 * jax.random.normal(k[5], (hidden, 1, 3, 3), jnp.float32)
    P["g2"] = 1.0 + 0.1 * jax.random.normal(k[6], (hidden,), jnp.float32)
    P["b2"] = 0.1 * jax.random.normal(k[7], (hidden,), jnp.float32)
    P["m2"] = 0.1 * jax.random.normal(k[8], (hidden,), jnp.float32)
    P["v2"] = 0.5 + jnp.abs(jax.random.normal(k[9], (hidden,), jnp.float32))
    P["w3_pt"] = 0.1 * jax.random.normal(k[10], (oup, hidden, 1, 1), jnp.float32)
    P["g3"] = 1.0 + 0.1 * jax.random.normal(k[11], (oup,), jnp.float32)
    P["b3"] = 0.1 * jax.random.normal(k[12], (oup,), jnp.float32)
    P["m3"] = 0.1 * jax.random.normal(k[13], (oup,), jnp.float32)
    P["v3"] = 0.5 + jnp.abs(jax.random.normal(k[14], (oup,), jnp.float32))
    return P


# ----------------------------- Pure-JAX reference ----------------------------

def ref_forward(x_nchw, P, inp, oup, stride, expand_ratio, eps=_BN_EPS):
    hidden = int(round(inp * expand_ratio))
    use_res = (stride == 1) and (inp == oup)
    dn = ("NCHW", "OIHW", "NCHW")

    def bn(y, g, b, m, v):
        s = (g / jnp.sqrt(v + eps))[None, :, None, None]
        return (y - m[None, :, None, None]) * s + b[None, :, None, None]

    h = x_nchw
    if expand_ratio != 1:
        h = lax.conv_general_dilated(h, P["w1_pt"], (1, 1), "VALID",
                                     dimension_numbers=dn)
        h = jax.nn.relu(bn(h, P["g1"], P["b1"], P["m1"], P["v1"]))
    h = lax.conv_general_dilated(h, P["wd_pt"], (stride, stride),
                                 [(1, 1), (1, 1)], dimension_numbers=dn,
                                 feature_group_count=hidden)
    h = jax.nn.relu(bn(h, P["g2"], P["b2"], P["m2"], P["v2"]))
    h = lax.conv_general_dilated(h, P["w3_pt"], (1, 1), "VALID",
                                 dimension_numbers=dn)
    h = bn(h, P["g3"], P["b3"], P["m3"], P["v3"])
    return x_nchw + h if use_res else h


# ---------------------------------- Main --------------------------------------

if __name__ == "__main__":
    # Primary config matches the reviewed module: InvertedResidual(4, 4, 1, 6)
    # -> hidden_dim=24, use_res_connect=True.  The others exercise the
    # expand_ratio == 1 branch and the stride == 2 (selection-matmul) branch.
    configs = [
        (4, 4, 1, 6),
        (4, 4, 1, 1),
        (4, 8, 2, 6),
    ]

    key = jax.random.PRNGKey(0)
    for inp, oup, stride, expand_ratio in configs:
        key, kx, kp = jax.random.split(key, 3)
        x_nchw = jax.random.normal(kx, (2, inp, 16, 16), jnp.float32)  # NCHW
        P = init_params(kp, inp, oup, expand_ratio)

        out = jax.block_until_ready(
            inverted_residual_forward(x_nchw, P, inp, oup, stride, expand_ratio))
        ref = jax.block_until_ready(
            ref_forward(x_nchw, P, inp, oup, stride, expand_ratio))

        assert out.shape == ref.shape, (out.shape, ref.shape)
        err = float(jnp.max(jnp.abs(out - ref)))
        if err > 1e-3:
            raise AssertionError(
                f"mismatch for cfg {(inp, oup, stride, expand_ratio)}: "
                f"max abs diff = {err}")

    print("KERNEL_OK")
</pallas_src>

<mosaic_0001>
module attributes {stable_mosaic.version = 11 : i64} {
  func.func @_inverted_residual_kernel(%arg0: i32, %arg1: memref<1x4x256xf32, #tpu.memory_space<vmem>>, %arg2: memref<24x4xf32, #tpu.memory_space<vmem>>, %arg3: memref<24x1xf32, #tpu.memory_space<vmem>>, %arg4: memref<24x9xf32, #tpu.memory_space<vmem>>, %arg5: memref<24x1xf32, #tpu.memory_space<vmem>>, %arg6: memref<9x256xf32, #tpu.memory_space<vmem>>, %arg7: memref<4x24xf32, #tpu.memory_space<vmem>>, %arg8: memref<4x1xf32, #tpu.memory_space<vmem>>, %arg9: memref<1x4x256xf32, #tpu.memory_space<vmem>>) attributes {dimension_semantics = [#tpu.dimension_semantics<parallel>], iteration_bounds = array<i64: 2>, scalar_prefetch = 0 : i64, scratch_operands = 0 : i64, tpu.core_type = #tpu.core_type<tc>, window_params = [{transform_indices = @transform_0, window_bounds = array<i64: 1, 4, 256>}, {pipeline_mode = #tpu.pipeline_mode<synchronous>, transform_indices = @transform_1, window_bounds = array<i64: 24, 4>}, {pipeline_mode = #tpu.pipeline_mode<synchronous>, transform_indices = @transform_2, window_bounds = array<i64: 24, 1>}, {pipeline_mode = #tpu.pipeline_mode<synchronous>, transform_indices = @transform_3, window_bounds = array<i64: 24, 9>}, {pipeline_mode = #tpu.pipeline_mode<synchronous>, transform_indices = @transform_4, window_bounds = array<i64: 24, 1>}, {pipeline_mode = #tpu.pipeline_mode<synchronous>, transform_indices = @transform_5, window_bounds = array<i64: 9, 256>}, {pipeline_mode = #tpu.pipeline_mode<synchronous>, transform_indices = @transform_6, window_bounds = array<i64: 4, 24>}, {pipeline_mode = #tpu.pipeline_mode<synchronous>, transform_indices = @transform_7, window_bounds = array<i64: 4, 1>}, {transform_indices = @transform_8, window_bounds = array<i64: 1, 4, 256>}]} {
    %c0 = arith.constant 0 : index
    %c0_0 = arith.constant 0 : index
    %c0_1 = arith.constant 0 : index
    %0 = vector.load %arg1[%c0, %c0_0, %c0_1] : memref<1x4x256xf32, #tpu.memory_space<vmem>>, vector<1x4x256xf32>
    %1 = vector.shape_cast %0 : vector<1x4x256xf32> to vector<4x256xf32>
    %c0_2 = arith.constant 0 : index
    %c0_3 = arith.constant 0 : index
    %2 = vector.load %arg2[%c0_2, %c0_3] : memref<24x4xf32, #tpu.memory_space<vmem>>, vector<24x4xf32>
    %cst = arith.constant dense<0.000000e+00> : vector<24x256xf32>
    %3 = tpu.matmul %2, %1, %cst {dimension_numbers = #tpu.dot_dimension_numbers<[1], [0], [0], [1], [0, 0, 1, 1], [], []>} : vector<24x4xf32>, vector<4x256xf32>, vector<24x256xf32> -> vector<24x256xf32>
    %c0_4 = arith.constant 0 : index
    %c0_5 = arith.constant 0 : index
    %4 = vector.load %arg3[%c0_4, %c0_5] : memref<24x1xf32, #tpu.memory_space<vmem>>, vector<24x1xf32>
    %5 = vector.broadcast %4 : vector<24x1xf32> to vector<24x256xf32>
    %6 = arith.addf %3, %5 : vector<24x256xf32>
    %cst_6 = arith.constant 0.000000e+00 : f32
    %7 = vector.broadcast %cst_6 : f32 to vector<24x256xf32>
    %8 = arith.maximumf %6, %7 : vector<24x256xf32>
    %c0_7 = arith.constant 0 : index
    %c0_8 = arith.constant 0 : index
    %9 = vector.load %arg5[%c0_7, %c0_8] : memref<24x1xf32, #tpu.memory_space<vmem>>, vector<24x1xf32>
    %10 = vector.shape_cast %9 : vector<24x1xf32> to vector<24x1xf32>
    %11 = vector.broadcast %10 : vector<24x1xf32> to vector<24x256xf32>
    %c17_i32 = arith.constant 17 : i32
    %12 = tpu.dynamic_rotate %8 by %c17_i32 dim 1 : vector<24x256xf32>, i32 -> vector<24x256xf32>
    %c0_9 = arith.constant 0 : index
    %c0_10 = arith.constant 0 : index
    %13 = vector.load %arg6[%c0_9, %c0_10] : memref<9x256xf32, #tpu.memory_space<vmem>>, vector<1x256xf32>
    %14 = vector.broadcast %13 : vector<1x256xf32> to vector<24x256xf32>
    %15 = arith.mulf %12, %14 : vector<24x256xf32>
    %c0_11 = arith.constant 0 : index
    %c0_12 = arith.constant 0 : index
    %16 = vector.load %arg4[%c0_11, %c0_12] : memref<24x9xf32, #tpu.memory_space<vmem>>, vector<24x1xf32>
    %17 = vector.broadcast %16 : vector<24x1xf32> to vector<24x256xf32>
    %18 = arith.mulf %15, %17 : vector<24x256xf32>
    %19 = arith.addf %11, %18 : vector<24x256xf32>
    %c16_i32 = arith.constant 16 : i32
    %20 = tpu.dynamic_rotate %8 by %c16_i32 dim 1 : vector<24x256xf32>, i32 -> vector<24x256xf32>
    %c1 = arith.constant 1 : index
    %c0_13 = arith.constant 0 : index
    %21 = vector.load %arg6[%c1, %c0_13] : memref<9x256xf32, #tpu.memory_space<vmem>>, vector<1x256xf32>
    %22 = vector.broadcast %21 : vector<1x256xf32> to vector<24x256xf32>
    %23 = arith.mulf %20, %22 : vector<24x256xf32>
    %c0_14 = arith.constant 0 : index
    %c1_15 = arith.constant 1 : index
    %24 = vector.load %arg4[%c0_14, %c1_15] : memref<24x9xf32, #tpu.memory_space<vmem>>, vector<24x1xf32>
    %25 = vector.broadcast %24 : vector<24x1xf32> to vector<24x256xf32>
    %26 = arith.mulf %23, %25 : vector<24x256xf32>
    %27 = arith.addf %19, %26 : vector<24x256xf32>
    %c15_i32 = arith.constant 15 : i32
    %28 = tpu.dynamic_rotate %8 by %c15_i32 dim 1 : vector<24x256xf32>, i32 -> vector<24x256xf32>
    %c2 = arith.constant 2 : index
    %c0_16 = arith.constant 0 : index
    %29 = vector.load %arg6[%c2, %c0_16] : memref<9x256xf32, #tpu.memory_space<vmem>>, vector<1x256xf32>
    %30 = vector.broadcast %29 : vector<1x256xf32> to vector<24x256xf32>
    %31 = arith.mulf %28, %30 : vector<24x256xf32>
    %c0_17 = arith.constant 0 : index
    %c2_18 = arith.constant 2 : index
    %32 = vector.load %arg4[%c0_17, %c2_18] : memref<24x9xf32, #tpu.memory_space<vmem>>, vector<24x1xf32>
    %33 = vector.broadcast %32 : vector<24x1xf32> to vector<24x256xf32>
    %34 = arith.mulf %31, %33 : vector<24x256xf32>
    %35 = arith.addf %27, %34 : vector<24x256xf32>
    %c1_i32 = arith.constant 1 : i32
    %36 = tpu.dynamic_rotate %8 by %c1_i32 dim 1 : vector<24x256xf32>, i32 -> vector<24x256xf32>
    %c3 = arith.constant 3 : index
    %c0_19 = arith.constant 0 : index
    %37 = vector.load %arg6[%c3, %c0_19] : memref<9x256xf32, #tpu.memory_space<vmem>>, vector<1x256xf32>
    %38 = vector.broadcast %37 : vector<1x256xf32> to vector<24x256xf32>
    %39 = arith.mulf %36, %38 : vector<24x256xf32>
    %c0_20 = arith.constant 0 : index
    %c3_21 = arith.constant 3 : index
    %40 = vector.load %arg4[%c0_20, %c3_21] : memref<24x9xf32, #tpu.memory_space<vmem>>, vector<24x1xf32>
    %41 = vector.broadcast %40 : vector<24x1xf32> to vector<24x256xf32>
    %42 = arith.mulf %39, %41 : vector<24x256xf32>
    %43 = arith.addf %35, %42 : vector<24x256xf32>
    %c0_22 = arith.constant 0 : index
    %c4 = arith.constant 4 : index
    %44 = vector.load %arg4[%c0_22, %c4] : memref<24x9xf32, #tpu.memory_space<vmem>>, vector<24x1xf32>
    %45 = vector.broadcast %44 : vector<24x1xf32> to vector<24x256xf32>
    %46 = arith.mulf %8, %45 : vector<24x256xf32>
    %47 = arith.addf %43, %46 : vector<24x256xf32>
    %c255_i32 = arith.constant 255 : i32
    %48 = tpu.dynamic_rotate %8 by %c255_i32 dim 1 : vector<24x256xf32>, i32 -> vector<24x256xf32>
    %c5 = arith.constant 5 : index
    %c0_23 = arith.constant 0 : index
    %49 = vector.load %arg6[%c5, %c0_23] : memref<9x256xf32, #tpu.memory_space<vmem>>, vector<1x256xf32>
    %50 = vector.broadcast %49 : vector<1x256xf32> to vector<24x256xf32>
    %51 = arith.mulf %48, %50 : vector<24x256xf32>
    %c0_24 = arith.constant 0 : index
    %c5_25 = arith.constant 5 : index
    %52 = vector.load %arg4[%c0_24, %c5_25] : memref<24x9xf32, #tpu.memory_space<vmem>>, vector<24x1xf32>
    %53 = vector.broadcast %52 : vector<24x1xf32> to vector<24x256xf32>
    %54 = arith.mulf %51, %53 : vector<24x256xf32>
    %55 = arith.addf %47, %54 : vector<24x256xf32>
    %c241_i32 = arith.constant 241 : i32
    %56 = tpu.dynamic_rotate %8 by %c241_i32 dim 1 : vector<24x256xf32>, i32 -> vector<24x256xf32>
    %c6 = arith.constant 6 : index
    %c0_26 = arith.constant 0 : index
    %57 = vector.load %arg6[%c6, %c0_26] : memref<9x256xf32, #tpu.memory_space<vmem>>, vector<1x256xf32>
    %58 = vector.broadcast %57 : vector<1x256xf32> to vector<24x256xf32>
    %59 = arith.mulf %56, %58 : vector<24x256xf32>
    %c0_27 = arith.constant 0 : index
    %c6_28 = arith.constant 6 : index
    %60 = vector.load %arg4[%c0_27, %c6_28] : memref<24x9xf32, #tpu.memory_space<vmem>>, vector<24x1xf32>
    %61 = vector.broadcast %60 : vector<24x1xf32> to vector<24x256xf32>
    %62 = arith.mulf %59, %61 : vector<24x256xf32>
    %63 = arith.addf %55, %62 : vector<24x256xf32>
    %c240_i32 = arith.constant 240 : i32
    %64 = tpu.dynamic_rotate %8 by %c240_i32 dim 1 : vector<24x256xf32>, i32 -> vector<24x256xf32>
    %c7 = arith.constant 7 : index
    %c0_29 = arith.constant 0 : index
    %65 = vector.load %arg6[%c7, %c0_29] : memref<9x256xf32, #tpu.memory_space<vmem>>, vector<1x256xf32>
    %66 = vector.broadcast %65 : vector<1x256xf32> to vector<24x256xf32>
    %67 = arith.mulf %64, %66 : vector<24x256xf32>
    %c0_30 = arith.constant 0 : index
    %c7_31 = arith.constant 7 : index
    %68 = vector.load %arg4[%c0_30, %c7_31] : memref<24x9xf32, #tpu.memory_space<vmem>>, vector<24x1xf32>
    %69 = vector.broadcast %68 : vector<24x1xf32> to vector<24x256xf32>
    %70 = arith.mulf %67, %69 : vector<24x256xf32>
    %71 = arith.addf %63, %70 : vector<24x256xf32>
    %c239_i32 = arith.constant 239 : i32
    %72 = tpu.dynamic_rotate %8 by %c239_i32 dim 1 : vector<24x256xf32>, i32 -> vector<24x256xf32>
    %c8 = arith.constant 8 : index
    %c0_32 = arith.constant 0 : index
    %73 = vector.load %arg6[%c8, %c0_32] : memref<9x256xf32, #tpu.memory_space<vmem>>, vector<1x256xf32>
    %74 = vector.broadcast %73 : vector<1x256xf32> to vector<24x256xf32>
    %75 = arith.mulf %72, %74 : vector<24x256xf32>
    %c0_33 = arith.constant 0 : index
    %c8_34 = arith.constant 8 : index
    %76 = vector.load %arg4[%c0_33, %c8_34] : memref<24x9xf32, #tpu.memory_space<vmem>>, vector<24x1xf32>
    %77 = vector.broadcast %76 : vector<24x1xf32> to vector<24x256xf32>
    %78 = arith.mulf %75, %77 : vector<24x256xf32>
    %79 = arith.addf %71, %78 : vector<24x256xf32>
    %cst_35 = arith.constant 0.000000e+00 : f32
    %80 = vector.broadcast %cst_35 : f32 to vector<24x256xf32>
    %81 = arith.maximumf %79, %80 : vector<24x256xf32>
    %c0_36 = arith.constant 0 : index
    %c0_37 = arith.constant 0 : index
    %82 = vector.load %arg7[%c0_36, %c0_37] : memref<4x24xf32, #tpu.memory_space<vmem>>, vector<4x24xf32>
    %cst_38 = arith.constant dense<0.000000e+00> : vector<4x256xf32>
    %83 = tpu.matmul %82, %81, %cst_38 {dimension_numbers = #tpu.dot_dimension_numbers<[1], [0], [0], [1], [0, 0, 1, 1], [], []>} : vector<4x24xf32>, vector<24x256xf32>, vector<4x256xf32> -> vector<4x256xf32>
    %c0_39 = arith.constant 0 : index
    %c0_40 = arith.constant 0 : index
    %84 = vector.load %arg8[%c0_39, %c0_40] : memref<4x1xf32, #tpu.memory_space<vmem>>, vector<4x1xf32>
    %85 = vector.broadcast %84 : vector<4x1xf32> to vector<4x256xf32>
    %86 = arith.addf %83, %85 : vector<4x256xf32>
    %87 = arith.addf %86, %1 : vector<4x256xf32>
    %c0_41 = arith.constant 0 : index
    %c0_42 = arith.constant 0 : index
    %c0_43 = arith.constant 0 : index
    %88 = vector.load %arg9[%c0_41, %c0_42, %c0_43] : memref<1x4x256xf32, #tpu.memory_space<vmem>>, vector<1x4x256xf32>
    %89 = vector.shape_cast %88 : vector<1x4x256xf32> to vector<4x256xf32>
    %90 = vector.shape_cast %87 : vector<4x256xf32> to vector<1x4x256xf32>
    tpu.vector_store %arg9[%c0_41, %c0_42, %c0_43], %90 {strides = array<i32>} : memref<1x4x256xf32, #tpu.memory_space<vmem>>, vector<1x4x256xf32>,
    return
  }
  func.func @transform_0(%arg0: i32) -> (i32, i32, i32) {
    %c0_i32 = arith.constant 0 : i32
    %c0_i32_0 = arith.constant 0 : i32
    %c0_i32_1 = arith.constant 0 : i32
    return %arg0, %c0_i32, %c0_i32_0 : i32, i32, i32
  }
  func.func @transform_1(%arg0: i32) -> (i32, i32) {
    %c0_i32 = arith.constant 0 : i32
    %c0_i32_0 = arith.constant 0 : i32
    %c0_i32_1 = arith.constant 0 : i32
    return %c0_i32, %c0_i32_0 : i32, i32
  }
  func.func @transform_2(%arg0: i32) -> (i32, i32) {
    %c0_i32 = arith.constant 0 : i32
    %c0_i32_0 = arith.constant 0 : i32
    %c0_i32_1 = arith.constant 0 : i32
    return %c0_i32, %c0_i32_0 : i32, i32
  }
  func.func @transform_3(%arg0: i32) -> (i32, i32) {
    %c0_i32 = arith.constant 0 : i32
    %c0_i32_0 = arith.constant 0 : i32
    %c0_i32_1 = arith.constant 0 : i32
    return %c0_i32, %c0_i32_0 : i32, i32
  }
  func.func @transform_4(%arg0: i32) -> (i32, i32) {
    %c0_i32 = arith.constant 0 : i32
    %c0_i32_0 = arith.constant 0 : i32
    %c0_i32_1 = arith.constant 0 : i32
    return %c0_i32, %c0_i32_0 : i32, i32
  }
  func.func @transform_5(%arg0: i32) -> (i32, i32) {
    %c0_i32 = arith.constant 0 : i32
    %c0_i32_0 = arith.constant 0 : i32
    %c0_i32_1 = arith.constant 0 : i32
    return %c0_i32, %c0_i32_0 : i32, i32
  }
  func.func @transform_6(%arg0: i32) -> (i32, i32) {
    %c0_i32 = arith.constant 0 : i32
    %c0_i32_0 = arith.constant 0 : i32
    %c0_i32_1 = arith.constant 0 : i32
    return %c0_i32, %c0_i32_0 : i32, i32
  }
  func.func @transform_7(%arg0: i32) -> (i32, i32) {
    %c0_i32 = arith.constant 0 : i32
    %c0_i32_0 = arith.constant 0 : i32
    %c0_i32_1 = arith.constant 0 : i32
    return %c0_i32, %c0_i32_0 : i32, i32
  }
  func.func @transform_8(%arg0: i32) -> (i32, i32, i32) {
    %c0_i32 = arith.constant 0 : i32
    %c0_i32_0 = arith.constant 0 : i32
    %c0_i32_1 = arith.constant 0 : i32
    return %arg0, %c0_i32, %c0_i32_0 : i32, i32, i32
  }
}

</mosaic_0001>

<bundles_post_ra>
// kernel: inverted_residual_forward.1
= control target key start
LH: loop header
LB: loop body
LE: loop exit
PB: predicated region body
PF: predicated region fallthrough
CT: control target
= control target key end

     0   :  { %s1175_s27 = smov 0   ;;  %s1795_s0 = inlined_call_operand.vmem [shape: f32[2,4,256], index: 0, kind: input, shape index: {}]   ;;  %s1796_s1 = inlined_call_operand.vmem [shape: f32[24,4], index: 1, kind: input, shape index: {}]   ;;  %s1797_s2 = inlined_call_operand.vmem [shape: f32[24,1], index: 2, kind: input, shape index: {}]   ;;  %s1798_s3 = inlined_call_operand.vmem [shape: f32[24,9], index: 3, kind: input, shape index: {}]   ;;  %s1799_s4 = inlined_call_operand.vmem [shape: f32[24,1], index: 4, kind: input, shape index: {}]   ;;  %s1800_s5 = inlined_call_operand.vmem [shape: f32[9,256], index: 5, kind: input, shape index: {}]   ;;  %s1801_s6 = inlined_call_operand.vmem [shape: f32[4,24], index: 6, kind: input, shape index: {}]   ;;  %s1802_s7 = inlined_call_operand.vmem [shape: f32[4,1], index: 7, kind: input, shape index: {}]   ;;  %s1803_s8 = inlined_call_operand.vmem [shape: f32[2,4,256], index: 8, kind: output, shape index: {}]  }
   0x1 LB: > { %s1027_s28 = sadd.s32 4294967295, %s1111_s27   ;;  %p1031_p0 = scmp.ge.s32.totalorder %s1111_s27, 1  ;;  %s1111_s27 = sphi %s1175_s27, %s18_s27  }
   0x2   : > { %p262_p1 = scmp.lt.s32.totalorder %s1111_s27, 3 }
   0x4   : > { %p263_p2 = pnand %p1031_p0, %p262_p1 }
   0x5   : > { %p296_p3 = scmp.lt.s32.totalorder (!%p263_p2), %s1027_s28, 1  ;;  %s1119_s16 = smov (!%p263_p2), 1  }
   0x6   : > { %266 = sbr.rel (%p263_p2) target bundleno = 576 (0x240), region = 52  ;;  %s1120_s17 = smov (!%p263_p2), 15  }
   0x7   : > { %s1121_s18 = smov (!%p263_p2), 17   ;;  %s1122_s19 = smov (!%p263_p2), 127  }
   0x8   : > { %s1123_s20 = smov (!%p263_p2), 16   ;;  %s1124_s21 = smov (!%p263_p2), 113  }
   0x9   : > { %s1126_s22 = smov (!%p263_p2), 112   ;;  %s1127_s23 = smov (!%p263_p2), 111  }
   0xb   : > { %v312_v0 = vld [vmem:[%s1797_s2 + $0x10] sm:$0xff]  ;;  %v310_v1 = vld [vmem:[%s1797_s2] sm:$0xff]  ;;  %v1804_v2 = vmov 0   ;;  %s1807_s28 = smov (!%p296_p3, %s1027_s28), 1  ;;  %v311_v5 = vld [vmem:[%s1797_s2 + $0x8] sm:$0xff]  ;;  %vm342_vm0 = vcmask 1043456  }
   0xc   : > { %1083 = vset.pattern.permute.xlu1 %v1804_v2  ;;  %1082 = vset.pattern.permute.xlu0 %v1804_v2  ;;  %s1055_s11 = sshll.u32 %s1807_s28, 3  ;;  %v405_v4 = vld [vmem:[%s1799_s4] sm:$0xff]  ;;  %vm332_vm1 = vcmask 31744   ;;  %v1214_v9 = vld [vmem:[%s1798_s3 + $0x8] sm:$0xff]  ;;  %v1114_v12 = vmov 1   ;;  %v309_v13 = vld [vmem:[%s1796_s1 + $0x10] sm:$0xff] }
   0xd   : > { %325 = vperm.xlu1 %1083, %v312_v0   ;;  %315 = vperm.xlu0 %1082, %v310_v1   ;;  %s300_s14 = scalar_lea.vmem %s1795_s0, %s1055_s11  ;;  %v307_v6 = vld [vmem:[%s1796_s1] sm:$0xff]  ;;  %v308_v11 = vld [vmem:[%s1796_s1 + $0x8] sm:$0xff]  ;;  %v1115_v15 = vmov 2   ;;  %v1243_v16 = vld [vmem:[%s1798_s3 + $0x10] sm:$0xff]  ;;  %v1116_v18 = vmov 3   ;;  %v1117_v19 = vmov 4   ;;  %v435_v0 = vlaneseq  ;;  %s305_s29 = scalar_lea.vmem %s1803_s8, %s1055_s11 }
   0xe   : > { %1084 = vset.pattern.permute.xlu2 %v1804_v2  ;;  %v306_v3 = vld [vmem:[%s300_s14] sm:$0xff]  ;;  %v406_v14 = vld [vmem:[%s1799_s4 + $0x8] sm:$0xff]  ;;  %v407_v17 = vld [vmem:[%s1799_s4 + $0x10] sm:$0xff]  ;;  %v1118_v20 = vmov 5   ;;  %v1125_v42 = vmov 6   ;;  %v1128_v62 = vmov 7  }
   0xf   : > { %329 = vst [vmem:[#allocation1] ss:$2 sm:$0xff] %v306_v3  ;;  %v1219_v10 = vld [vmem:[%s1798_s3] sm:$0xff]  ;;  %415 = vperm.xlu2 %1084, %v406_v14   ;;  %vm915_vm10 = vcmask 195584  }
  0x15   : > { %410 = vperm.xlu1 %1083, %v405_v4   ;;  %320 = vperm.xlu0 %1082, %v311_v5   ;;  %v1396_v5 = vand.u32 127, %v435_v0  ;;  %v1044_v0 = vld [vmem:[%s1800_s5 + $0x1] ss:$8 sm:$0x3] }
  0x16   : > { %v330_v7 = vld.sshfl [vmem:[#allocation1] sm:$0xff pattern:$0x75316420]  ;;  %v331_v8 = vld.sshfl [vmem:[#allocation1 + $0x8] sm:$0xff pattern:$0x75316420] }
  0x17   : > { %1036 = vmatpush.msk.msra.mxu0 %vm342_vm0, %v330_v7  ;;  %1040 = vmatpush.msk.msra.mxu1 %vm342_vm0, %v331_v8  ;;  %959 = vst [vmem:[#allocation1] ss:$2 sm:$0xff] %v306_v3  ;;  %vm554_vm2 = vcmp.lt.s32.totalorder %v1396_v5, 15  ;;  %vm437_vm3 = vcmp.lt.s32.totalorder %v1396_v5, 17  ;;  %vm610_vm4 = vcmp.lt.s32.totalorder %v1396_v5, 1  ;;  %vm690_vm5 = vcmp.lt.s32.totalorder %v1396_v5, 127 }
  0x18   : > { %1037 = vmatmul.msk.f32.vlgmr.msra.gmra.mxu0 %vm332_vm1, %v307_v6  ;;  %1041 = vmatmul.msk.f32.vlgmr.msra.gmra.mxu1 %vm332_vm1, %v307_v6  ;;  %vm498_vm6 = vcmp.lt.s32.totalorder %v1396_v5, 16  ;;  %vm746_vm7 = vcmp.lt.s32.totalorder %v1396_v5, 113  ;;  %vm802_vm8 = vcmp.lt.s32.totalorder %v1396_v5, 112  ;;  %vm858_vm9 = vcmp.lt.s32.totalorder %v1396_v5, 111 }
  0x19   : > { %420 = vperm.xlu2 %1084, %v407_v17  }
  0x1d   : > { %466 = vperm.xlu1 %1083, %v1214_v9   ;;  %461 = vperm.xlu0 %1082, %v1219_v10  }
  0x20   : > { %1038 = vmatmul.msk.f32.gmra.mxu0 %vm332_vm1, %v308_v11  ;;  %1042 = vmatmul.msk.f32.gmra.mxu1 %vm332_vm1, %v308_v11 }
  0x21   : > { %471 = vperm.xlu2 %1084, %v1243_v16  }
  0x25   : > { %1086 = vset.pattern.permute.xlu1 %v1114_v12  ;;  %1085 = vset.pattern.permute.xlu0 %v1114_v12 }
  0x26   : > { %523 = vperm.xlu1 %1086, %v1214_v9   ;;  %519 = vperm.xlu0 %1085, %v1219_v10  }
  0x28   : > { %1039 = vmatmul.msk.f32.gmra.mxu0 %vm332_vm1, %v309_v13  ;;  %1043 = vmatmul.msk.f32.gmra.mxu1 %vm332_vm1, %v309_v13 }
  0x29   : > { %1087 = vset.pattern.permute.xlu2 %v1114_v12 }
  0x2a   : > { %527 = vperm.xlu2 %1087, %v1243_v16  }
  0x2e   : > { %1088 = vset.pattern.permute.xlu1 %v1115_v15  ;;  %1090 = vset.pattern.permute.xlu0 %v1115_v15 }
  0x2f   : > { %575 = vperm.xlu1 %1088, %v1219_v10   ;;  %583 = vperm.xlu0 %1090, %v1243_v16  }
  0x32   : > { %1089 = vset.pattern.permute.xlu2 %v1115_v15  ;;  %v1129_v15 = vmov 8  }
  0x33   : > { %579 = vperm.xlu2 %1089, %v1214_v9  }
  0x37   : > { %1091 = vset.pattern.permute.xlu1 %v1116_v18  ;;  %1093 = vset.pattern.permute.xlu0 %v1117_v19 }
  0x38   : > { %639 = vperm.xlu1 %1091, %v1243_v16   ;;  %663 = vperm.xlu0 %1093, %v1243_v16  }
  0x3b   : > { %1092 = vset.pattern.permute.xlu2 %v1116_v18 }
  0x3c   : > { %635 = vperm.xlu2 %1092, %v1214_v9  }
  0x40   : > { %1095 = vset.pattern.permute.xlu1 %v1117_v19  ;;  %1094 = vset.pattern.permute.xlu0 %v1116_v18 }
  0x41   : > { %659 = vperm.xlu1 %1095, %v1214_v9   ;;  %631 = vperm.xlu0 %1094, %v1219_v10  }
  0x44   : > { %1096 = vset.pattern.permute.xlu2 %v1118_v20 }
  0x45   : > { %719 = vperm.xlu2 %1096, %v1243_v16  }
  0x49   : > { %655 = vperm.xlu1 %1095, %v1219_v10   ;;  %1097 = vset.pattern.permute.xlu0 %v1125_v42 }
  0x4d   : > { %715 = vperm.xlu2 %1096, %v1214_v9  }
  0x51   : > { %1098 = vset.pattern.permute.xlu1 %v1128_v62 }
  0x69   : > { %v1277_v31 = vpop.permute.xlu2 %415 }
  0x73   : > { %v1287_v35 = vpop.permute.xlu2 %420 }
  0x7b   : > { %v1297_v37 = vpop.permute.xlu2 %471 }
  0x7f   : > { %v316_v21 = vpop.permute.xlu0 %315  ;;  %v326_v38 = vpop.permute.xlu1 %325 }
  0x84   : > { %v1309_v41 = vpop.permute.xlu2 %527 }
  0x87   : > { %v321_v29 = vpop.permute.xlu0 %320  ;;  %v1315_v44 = vpop.permute.xlu1 %410 }
  0x8d   : > { %v1323_v47 = vpop.permute.xlu2 %579 }
  0x8f   : > { %v1327_v49 = vpop.permute.xlu1 %466  ;;  %v1345_v52 = vpop.permute.xlu0 %461 }
  0x95   : > { %v364_v22 = vpop.f32.mrf.mxu0  ;;  %v390_v23 = vpop.f32.mrf.mxu1 }
  0x96   : > { %v365_v24 = vadd.f32 %v364_v22, %v316_v21  ;;  %v391_v25 = vadd.f32 %v390_v23, %v316_v21  ;;  %v1335_v50 = vpop.permute.xlu2 %635  ;;  %v1046_v22 = vld [vmem:[%s1800_s5 + $0x3] ss:$8 sm:$0x3]  ;;  %v444_v23 = vld [vmem:[%s1800_s5] ss:$8 sm:$0x3] }
  0x98   : > { %v1261_v26 = vmax.f32 %v365_v24, 0.0  ;;  %v1263_v27 = vmax.f32 %v391_v25, 0.0  ;;  %v1343_v51 = vpop.permute.xlu1 %523  ;;  %v1357_v55 = vpop.permute.xlu0 %519  ;;  %v1439_v24 = vperm.slane %v1046_v22, 0  ;;  %v1441_v25 = vperm.slane %v1046_v22, 1 }
  0x9a   : > { %604 = vrot.lane.b32.xlu2 %v1263_v27, %s1119_s16  ;;  %542 = vrot.lane.b32.xlu1 %v1261_v26, %s1120_s17 }
  0x9b   : > { %423 = vrot.lane.b32.xlu0 %v1261_v26, %s1121_s18 }
  0x9d   : > { %v367_v28 = vpop.f32.mrf.mxu0  ;;  %v393_v33 = vpop.f32.mrf.mxu1 }
  0x9e   : > { %v368_v30 = vadd.f32 %v367_v28, %v321_v29  ;;  %v394_v34 = vadd.f32 %v393_v33, %v321_v29  ;;  %v1449_v33 = vperm.slane %v444_v23, 1 }
  0x9f   : > { %v1347_v53 = vpop.permute.xlu2 %719 }
  0xa0   : > { %v1279_v32 = vmax.f32 %v368_v30, 0.0  ;;  %v1289_v36 = vmax.f32 %v394_v34, 0.0  ;;  %v1447_v30 = vperm.slane %v444_v23, 0 }
  0xa1   : > { %v1355_v54 = vpop.permute.xlu1 %575  ;;  %v1368_v58 = vpop.permute.xlu0 %583 }
  0xa2   : > { %684 = vrot.lane.b32.xlu2 %v1263_v27, %s1122_s19  ;;  %548 = vrot.lane.b32.xlu1 %v1263_v27, %s1120_s17 }
  0xa3   : > { %429 = vrot.lane.b32.xlu0 %v1263_v27, %s1121_s18 }
  0xa5   : > { %v370_v39 = vpop.f32.mrf.mxu0  ;;  %v396_v45 = vpop.f32.mrf.mxu1 }
  0xa6   : > { %v371_v40 = vadd.f32 %v370_v39, %v326_v38  ;;  %v397_v46 = vadd.f32 %v396_v45, %v326_v38 }
  0xa7   : > { %v1363_v56 = vpop.permute.xlu2 %715 }
  0xa8   : > { %v1313_v43 = vmax.f32 %v371_v40, 0.0  ;;  %v1325_v48 = vmax.f32 %v397_v46, 0.0 }
  0xaa   : > { %544 = vrot.lane.b32.xlu2 %v1279_v32, %s1120_s17  ;;  %598 = vrot.lane.b32.xlu1 %v1261_v26, %s1119_s16  ;;  %v1366_v57 = vpop.permute.xlu1 %639  ;;  %v1382_v61 = vpop.permute.xlu0 %663 }
  0xab   : > { %486 = vrot.lane.b32.xlu0 %v1261_v26, %s1123_s20 }
  0xb2   : > { %550 = vrot.lane.b32.xlu2 %v1289_v36, %s1120_s17  ;;  %678 = vrot.lane.b32.xlu1 %v1261_v26, %s1122_s19 }
  0xb3   : > { %492 = vrot.lane.b32.xlu0 %v1263_v27, %s1123_s20  ;;  %v1376_v60 = vpop.permute.xlu1 %659  ;;  %v632_v1 = vpop.permute.xlu0 %631 }
  0xba   : > { %600 = vrot.lane.b32.xlu2 %v1279_v32, %s1119_s16  ;;  %425 = vrot.lane.b32.xlu1 %v1279_v32, %s1121_s18 }
  0xbb   : > { %606 = vrot.lane.b32.xlu0 %v1289_v36, %s1119_s16  ;;  %v1394_v3 = vpop.permute.xlu1 %655 }
  0xc2   : > { %686 = vrot.lane.b32.xlu2 %v1289_v36, %s1122_s19  ;;  %431 = vrot.lane.b32.xlu1 %v1289_v36, %s1121_s18 }
  0xc3   : > { %736 = vrot.lane.b32.xlu0 %v1279_v32, %s1124_s21 }
  0xca   : > { %427 = vrot.lane.b32.xlu2 %v1313_v43, %s1121_s18  ;;  %488 = vrot.lane.b32.xlu1 %v1279_v32, %s1123_s20 }
  0xcb   : > { %546 = vrot.lane.b32.xlu0 %v1313_v43, %s1120_s17 }
  0xd2   : > { %433 = vrot.lane.b32.xlu2 %v1325_v48, %s1121_s18  ;;  %494 = vrot.lane.b32.xlu1 %v1289_v36, %s1123_s20 }
  0xd3   : > { %552 = vrot.lane.b32.xlu0 %v1325_v48, %s1120_s17 }
  0xda   : > { %490 = vrot.lane.b32.xlu2 %v1313_v43, %s1123_s20  ;;  %680 = vrot.lane.b32.xlu1 %v1279_v32, %s1122_s19 }
  0xdb   : > { %682 = vrot.lane.b32.xlu0 %v1313_v43, %s1122_s19 }
  0xe2   : > { %496 = vrot.lane.b32.xlu2 %v1325_v48, %s1123_s20  ;;  %742 = vrot.lane.b32.xlu1 %v1289_v36, %s1124_s21 }
  0xe3   : > { %800 = vrot.lane.b32.xlu0 %v1325_v48, %s1126_s22 }
  0xea   : > { %602 = vrot.lane.b32.xlu2 %v1313_v43, %s1119_s16  ;;  %608 = vrot.lane.b32.xlu1 %v1325_v48, %s1119_s16 }
  0xeb   : > { %775 = vperm.xlu0 %1097, %v1243_v16  }
  0xf2   : > { %744 = vrot.lane.b32.xlu2 %v1325_v48, %s1124_s21  ;;  %688 = vrot.lane.b32.xlu1 %v1325_v48, %s1122_s19 }
  0xf3   : > { %850 = vrot.lane.b32.xlu0 %v1313_v43, %s1127_s23 }
  0xf4   : > { %v605_v59 = vpop.permute.xlu2 %604 }
  0xfa   : > { %794 = vrot.lane.b32.xlu2 %v1313_v43, %s1126_s22  ;;  %738 = vrot.lane.b32.xlu1 %v1313_v43, %s1124_s21 }
  0xfb   : > { %771 = vperm.xlu0 %1097, %v1214_v9  }
  0xfc   : > { %v1386_v63 = vpop.permute.xlu2 %684 }
 0x102   : > { %740 = vrot.lane.b32.xlu2 %v1263_v27, %s1124_s21  ;;  %734 = vrot.lane.b32.xlu1 %v1261_v26, %s1124_s21 }
 0x103   : > { %796 = vrot.lane.b32.xlu0 %v1263_v27, %s1126_s22 }
 0x104   : > { %v545_v4 = vpop.permute.xlu2 %544 }
 0x10a   : > { %798 = vrot.lane.b32.xlu2 %v1289_v36, %s1126_s22  ;;  %792 = vrot.lane.b32.xlu1 %v1279_v32, %s1126_s22 }
 0x10b   : > { %767 = vperm.xlu0 %1097, %v1219_v10  }
 0x10c   : > { %v551_v6 = vpop.permute.xlu2 %550  ;;  %v543_v7 = vpop.permute.xlu1 %542 }
 0x10d   : > { %v1406_v8 = vsel %vm554_vm2, %v545_v4, %v551_v6  ;;  %v1410_v11 = vsel %vm554_vm2, %v551_v6, %v545_v4  ;;  %v424_v12 = vpop.permute.xlu0 %423  ;;  %v1045_v4 = vld [vmem:[%s1800_s5 + $0x2] ss:$8 sm:$0x3] }
 0x112   : > { %711 = vperm.xlu2 %1096, %v1219_v10   ;;  %856 = vrot.lane.b32.xlu1 %v1325_v48, %s1127_s23 }
 0x113   : > { %846 = vrot.lane.b32.xlu0 %v1261_v26, %s1127_s23 }
 0x114   : > { %v1418_v13 = vpop.permute.xlu2 %600  ;;  %v549_v14 = vpop.permute.xlu1 %548  ;;  %1101 = vset.pattern.permute.xlu0 %v1129_v15 }
 0x115   : > { %v555_v17 = vsel %vm554_vm2, %v543_v7, %v549_v14  ;;  %v558_v18 = vsel %vm554_vm2, %v549_v14, %v543_v7  ;;  %v430_v19 = vpop.permute.xlu0 %429  ;;  %v1478_v14 = vperm.slane %v1045_v4, 1 }
 0x116   : > { %v438_v20 = vsel %vm437_vm3, %v424_v12, %v430_v19  ;;  %v441_v21 = vsel %vm437_vm3, %v430_v19, %v424_v12  ;;  %v1476_v12 = vperm.slane %v1045_v4, 0 }
 0x117   : > { %v450_v6 = vmul.f32 %v1447_v30, %v441_v21  ;;  %v451_v7 = vmul.f32 %v1449_v33, %v438_v20 }
 0x119   : > { %v474_v21 = vmul.f32 %v1345_v52, %v450_v6  ;;  %v475_v22 = vmul.f32 %v1345_v52, %v451_v7  ;;  %v569_v52 = vmul.f32 %v1478_v14, %v555_v17 }
 0x11a   : > { %790 = vrot.lane.b32.xlu2 %v1261_v26, %s1126_s22  ;;  %831 = vperm.xlu1 %1098, %v1243_v16  }
 0x11b   : > { %883 = vperm.xlu0 %1101, %v1214_v9   ;;  %1099 = vset.pattern.permute.xlu2 %v1129_v15  ;;  %v480_v6 = vadd.f32 %v474_v21, %v1315_v44  ;;  %v587_v17 = vmul.f32 %v1355_v54, %v569_v52 }
 0x11c   : > { %v1445_v28 = vpop.permute.xlu2 %686  ;;  %v599_v29 = vpop.permute.xlu1 %598 }
 0x11d   : > { %v611_v34 = vsel %vm610_vm4, %v599_v29, %v605_v59  ;;  %v614_v38 = vsel %vm610_vm4, %v605_v59, %v599_v29  ;;  %v487_v39 = vpop.permute.xlu0 %486  ;;  %v1471_v59 = vperm.slane %v1044_v0, 0 }
 0x11e   : > { %v624_v40 = vmul.f32 %v1439_v24, %v614_v38  ;;  %v625_v42 = vmul.f32 %v1441_v25, %v611_v34 }
 0x120   : > { %v642_v45 = vmul.f32 %v632_v1, %v624_v40  ;;  %v643_v46 = vmul.f32 %v632_v1, %v625_v42  ;;  %v1473_v1 = vperm.slane %v1044_v0, 1  ;;  %v568_v42 = vmul.f32 %v1476_v12, %v558_v18 }
 0x122   : > { %854 = vrot.lane.b32.xlu2 %v1289_v36, %s1127_s23  ;;  %848 = vrot.lane.b32.xlu1 %v1279_v32, %s1127_s23  ;;  %v586_v18 = vmul.f32 %v1355_v54, %v568_v42 }
 0x123   : > { %1104 = vset.pattern.permute.xlu0 %v1804_v2 }
 0x124   : > { %v428_v19 = vpop.permute.xlu2 %427  ;;  %v679_v20 = vpop.permute.xlu1 %678 }
 0x125   : > { %v1485_v23 = vsel %vm690_vm5, %v679_v20, %v1386_v63  ;;  %v1490_v29 = vsel %vm690_vm5, %v1386_v63, %v679_v20  ;;  %v493_v34 = vpop.permute.xlu0 %492  ;;  %v481_v63 = vadd.f32 %v475_v22, %v1315_v44 }
 0x126   : > { %v499_v38 = vsel %vm498_vm6, %v487_v39, %v493_v34  ;;  %v502_v40 = vsel %vm498_vm6, %v493_v34, %v487_v39 }
 0x127   : > { %v512_v0 = vmul.f32 %v1471_v59, %v502_v40  ;;  %v513_v4 = vmul.f32 %v1473_v1, %v499_v38 }
 0x129   : > { %v530_v7 = vmul.f32 %v1357_v55, %v512_v0  ;;  %v531_v20 = vmul.f32 %v1357_v55, %v513_v4 }
 0x12a   : > { %887 = vperm.xlu2 %1099, %v1243_v16   ;;  %827 = vperm.xlu1 %1098, %v1214_v9  }
 0x12b   : > { %v536_v39 = vadd.f32 %v530_v7, %v480_v6  ;;  %v537_v34 = vadd.f32 %v531_v20, %v481_v63 }
 0x12c   : > { %v434_v40 = vpop.permute.xlu2 %433  ;;  %v426_v38 = vpop.permute.xlu1 %425 }
 0x12d   : > { %v592_v2 = vadd.f32 %v586_v18, %v536_v39  ;;  %v593_v21 = vadd.f32 %v587_v17, %v537_v34  ;;  %v1510_v44 = vsel %vm437_vm3, %v428_v19, %v434_v40  ;;  %v1514_v55 = vsel %vm437_vm3, %v434_v40, %v428_v19  ;;  %v607_v16 = vpop.permute.xlu0 %606 }
 0x12e   : > { %v612_v9 = vsel %vm610_vm4, %v1418_v13, %v607_v16  ;;  %v615_v54 = vsel %vm610_vm4, %v607_v16, %v1418_v13  ;;  %v570_v34 = vmul.f32 %v1476_v12, %v1410_v11  ;;  %v571_v40 = vmul.f32 %v1478_v14, %v1406_v8 }
 0x12f   : > { %v1522_v22 = vadd.f32 %v642_v45, %v592_v2  ;;  %v1524_v42 = vadd.f32 %v643_v46, %v593_v21  ;;  %v626_v21 = vmul.f32 %v1439_v24, %v615_v54  ;;  %v627_v16 = vmul.f32 %v1441_v25, %v612_v9 }
 0x132   : > { %1100 = vset.pattern.permute.xlu2 %v1128_v62  ;;  %852 = vrot.lane.b32.xlu1 %v1263_v27, %s1127_s23  ;;  %v1805_v62 = vmov 0  }
 0x133   : > { %823 = vperm.xlu2 %1100, %v1219_v10   ;;  %1102 = vset.pattern.permute.xlu1 %v1129_v15 }
 0x134   : > { %v491_v19 = vpop.permute.xlu2 %490  ;;  %v432_v52 = vpop.permute.xlu1 %431 }
 0x135   : > { %v439_v0 = vsel %vm437_vm3, %v426_v38, %v432_v52  ;;  %v442_v2 = vsel %vm437_vm3, %v432_v52, %v426_v38  ;;  %v1535_v13 = vpop.permute.xlu0 %736  ;;  %v1047_v52 = vld [vmem:[%s1800_s5 + $0x5] ss:$8 sm:$0x3] }
 0x136   : > { %v452_v6 = vmul.f32 %v1447_v30, %v442_v2  ;;  %v453_v15 = vmul.f32 %v1449_v33, %v439_v0  ;;  %v1568_v9 = vperm.slane %v1047_v52, 1 }
 0x138   : > { %v476_v63 = vmul.f32 %v1327_v49, %v452_v6  ;;  %v477_v7 = vmul.f32 %v1327_v49, %v453_v15  ;;  %v1566_v15 = vperm.slane %v1047_v52, 0 }
 0x13a   : > { %879 = vperm.xlu1 %1102, %v1219_v10   ;;  %v482_v0 = vadd.f32 %v476_v63, %v1277_v31  ;;  %v483_v2 = vadd.f32 %v477_v7, %v1277_v31  ;;  %v645_v63 = vmul.f32 %v1335_v50, %v627_v16 }
 0x13b   : > { %1103 = vset.pattern.permute.xlu2 %v1805_v62  ;;  %v588_v62 = vmul.f32 %v1323_v47, %v570_v34 }
 0x13c   : > { %v497_v45 = vpop.permute.xlu2 %496  ;;  %v489_v46 = vpop.permute.xlu1 %488 }
 0x13d   : > { %v547_v4 = vpop.permute.xlu0 %546 }
 0x144   : > { %v1543_v20 = vpop.permute.xlu2 %602  ;;  %v495_v18 = vpop.permute.xlu1 %494 }
 0x145   : > { %v500_v17 = vsel %vm498_vm6, %v489_v46, %v495_v18  ;;  %v503_v10 = vsel %vm498_vm6, %v495_v18, %v489_v46  ;;  %v553_v39 = vpop.permute.xlu0 %552  ;;  %v589_v46 = vmul.f32 %v1323_v47, %v571_v40  ;;  %v644_v18 = vmul.f32 %v1335_v50, %v626_v21 }
 0x146   : > { %v514_v38 = vmul.f32 %v1471_v59, %v503_v10  ;;  %v515_v49 = vmul.f32 %v1473_v1, %v500_v17  ;;  %v669_v47 = vmul.f32 %v1376_v60, %v1289_v36 }
 0x148   : > { %v532_v11 = vmul.f32 %v1343_v51, %v514_v38  ;;  %v533_v8 = vmul.f32 %v1343_v51, %v515_v49  ;;  %v668_v51 = vmul.f32 %v1376_v60, %v1279_v32 }
 0x14a   : > { %v538_v6 = vadd.f32 %v532_v11, %v482_v0  ;;  %v539_v54 = vadd.f32 %v533_v8, %v483_v2  ;;  %v504_v11 = vsel %vm498_vm6, %v497_v45, %v491_v19  ;;  %v454_v8 = vmul.f32 %v1447_v30, %v1514_v55 }
 0x14c   : > { %v594_v17 = vadd.f32 %v588_v62, %v538_v6  ;;  %v595_v31 = vadd.f32 %v589_v46, %v539_v54  ;;  %v1572_v7 = vpop.permute.xlu2 %744  ;;  %v681_v10 = vpop.permute.xlu1 %680  ;;  %v557_v6 = vsel %vm554_vm2, %v547_v4, %v553_v39  ;;  %v560_v54 = vsel %vm554_vm2, %v553_v39, %v547_v4 }
 0x14d   : > { %v692_v34 = vsel %vm690_vm5, %v681_v10, %v1445_v28  ;;  %v695_v40 = vsel %vm690_vm5, %v1445_v28, %v681_v10  ;;  %v1584_v50 = vpop.permute.xlu0 %682  ;;  %v501_v28 = vsel %vm498_vm6, %v491_v19, %v497_v45  ;;  %v478_v19 = vmul.f32 %v1297_v37, %v454_v8 }
 0x14e   : > { %v706_v38 = vmul.f32 %v1566_v15, %v692_v34  ;;  %v707_v49 = vmul.f32 %v1568_v9, %v695_v40  ;;  %v650_v21 = vadd.f32 %v644_v18, %v594_v17  ;;  %v651_v16 = vadd.f32 %v645_v63, %v595_v31 }
 0x14f   : > { %v572_v4 = vmul.f32 %v1476_v12, %v560_v54  ;;  %v573_v39 = vmul.f32 %v1478_v14, %v557_v6  ;;  %v705_v8 = vmul.f32 %v1568_v9, %v1490_v29 }
 0x150   : > { %v724_v32 = vmul.f32 %v1363_v56, %v706_v38  ;;  %v725_v36 = vmul.f32 %v1363_v56, %v707_v49  ;;  %v674_v60 = vadd.f32 %v668_v51, %v650_v21  ;;  %v675_v52 = vadd.f32 %v669_v47, %v651_v16 }
 0x151   : > { %v455_v56 = vmul.f32 %v1449_v33, %v1510_v44  ;;  %v516_v33 = vmul.f32 %v1471_v59, %v504_v11  ;;  %v517_v44 = vmul.f32 %v1473_v1, %v501_v28  ;;  %v590_v59 = vmul.f32 %v1368_v58, %v572_v4 }
 0x152   : > { %v1591_v0 = vadd.f32 %v724_v32, %v674_v60  ;;  %v1593_v2 = vadd.f32 %v725_v36, %v675_v52  ;;  %v591_v1 = vmul.f32 %v1368_v58, %v573_v39  ;;  %v670_v21 = vmul.f32 %v1382_v61, %v1313_v43 }
 0x153   : > { %v479_v45 = vmul.f32 %v1297_v37, %v455_v56  ;;  %v534_v63 = vmul.f32 %v1309_v41, %v516_v33  ;;  %v535_v17 = vmul.f32 %v1309_v41, %v517_v44  ;;  %v666_v43 = vmul.f32 %v1394_v3, %v1261_v26 }
 0x154   : > { %v1603_v62 = vpop.permute.xlu2 %794  ;;  %v743_v46 = vpop.permute.xlu1 %742 }
 0x155   : > { %v748_v18 = vsel %vm746_vm7, %v1535_v13, %v743_v46  ;;  %v751_v30 = vsel %vm746_vm7, %v743_v46, %v1535_v13  ;;  %v1615_v55 = vpop.permute.xlu0 %800  ;;  %v484_v13 = vadd.f32 %v478_v19, %v1287_v35  ;;  %v485_v31 = vadd.f32 %v479_v45, %v1287_v35 }
 0x156   : > { %v672_v33 = vadd.f32 %v666_v43, %v1522_v22 }
 0x157   : > { %v540_v14 = vadd.f32 %v534_v63, %v484_v13  ;;  %v541_v47 = vadd.f32 %v535_v17, %v485_v31  ;;  %v1049_v13 = vld [vmem:[%s1800_s5 + $0x7] ss:$8 sm:$0x3] }
 0x159   : > { %v596_v58 = vadd.f32 %v590_v59, %v540_v14  ;;  %v597_v40 = vadd.f32 %v591_v1, %v541_v47  ;;  %v1050_v1 = vld [vmem:[%s1800_s5 + $0x10] ss:$8 sm:$0x3]  ;;  %v1710_v14 = vperm.slane %v1049_v13, 1 }
 0x15c   : > { %v1629_v10 = vpop.permute.xlu2 %740  ;;  %v609_v51 = vpop.permute.xlu1 %608 }
 0x15d   : > { %v613_v37 = vsel %vm610_vm4, %v1543_v20, %v609_v51  ;;  %v616_v12 = vsel %vm610_vm4, %v609_v51, %v1543_v20  ;;  %v1637_v41 = vpop.permute.xlu0 %775  ;;  %v671_v20 = vmul.f32 %v1382_v61, %v1325_v48  ;;  %v667_v48 = vmul.f32 %v1394_v3, %v1263_v27 }
 0x15e   : > { %v628_v35 = vmul.f32 %v1439_v24, %v616_v12  ;;  %v629_v34 = vmul.f32 %v1441_v25, %v613_v37  ;;  %v1048_v25 = vld [vmem:[%s1800_s5 + $0x6] ss:$8 sm:$0x3]  ;;  %v704_v61 = vmul.f32 %v1566_v15, %v1485_v23  ;;  %v1708_v12 = vperm.slane %v1049_v13, 0 }
 0x15f   : > { %v1652_v11 = vperm.slane %v1048_v25, 0  ;;  %v673_v44 = vadd.f32 %v667_v48, %v1524_v42 }
 0x160   : > { %v646_v38 = vmul.f32 %v1366_v57, %v628_v35  ;;  %v647_v49 = vmul.f32 %v1366_v57, %v629_v34  ;;  %v1654_v57 = vperm.slane %v1048_v25, 1  ;;  %v1722_v34 = vperm.slane %v1050_v1, 0 }
 0x161   : > { %v762_v56 = vmul.f32 %v1652_v11, %v748_v18 }
 0x162   : > { %v652_v16 = vadd.f32 %v646_v38, %v596_v58  ;;  %v653_v32 = vadd.f32 %v647_v49, %v597_v40  ;;  %v763_v46 = vmul.f32 %v1654_v57, %v751_v30  ;;  %v1724_v58 = vperm.slane %v1050_v1, 1 }
 0x164   : > { %v1647_v36 = vpop.permute.xlu2 %798  ;;  %v689_v60 = vpop.permute.xlu1 %688  ;;  %v676_v24 = vadd.f32 %v670_v21, %v652_v16  ;;  %v677_v52 = vadd.f32 %v671_v20, %v653_v32 }
 0x165   : > { %v851_v28 = vpop.permute.xlu0 %850  ;;  %v693_v39 = vsel %vm690_vm5, %v1584_v50, %v689_v60  ;;  %v696_v63 = vsel %vm690_vm5, %v689_v60, %v1584_v50 }
 0x166   : > { %v708_v31 = vmul.f32 %v1566_v15, %v693_v39  ;;  %v709_v50 = vmul.f32 %v1568_v9, %v696_v63  ;;  %v805_v15 = vsel %vm802_vm8, %v1603_v62, %v1615_v55  ;;  %v808_v9 = vsel %vm802_vm8, %v1615_v55, %v1603_v62 }
 0x167   : > { %v820_v62 = vmul.f32 %v1708_v12, %v805_v15  ;;  %v821_v55 = vmul.f32 %v1710_v14, %v808_v9 }
 0x168   : > { %v726_v47 = vmul.f32 %v1347_v53, %v708_v31  ;;  %v727_v35 = vmul.f32 %v1347_v53, %v709_v50 }
 0x16a   : > { %v732_v32 = vadd.f32 %v726_v47, %v676_v24  ;;  %v733_v60 = vadd.f32 %v727_v35, %v677_v52  ;;  %v909_v24 = vld [vmem:[%s1802_s7] sm:$0xf] }
 0x16b   : > { %912 = vperm.xlu2 %1103, %v909_v24  }
 0x16c   : > { %v712_v6 = vpop.permute.xlu2 %711  ;;  %v739_v54 = vpop.permute.xlu1 %738 }
 0x16d   : > { %v722_v26 = vmul.f32 %v712_v6, %v704_v61  ;;  %v723_v19 = vmul.f32 %v712_v6, %v705_v8  ;;  %v772_v45 = vpop.permute.xlu0 %771 }
 0x16e   : > { %v780_v27 = vmul.f32 %v772_v45, %v762_v56  ;;  %v781_v3 = vmul.f32 %v772_v45, %v763_v46 }
 0x16f   : > { %v1668_v4 = vadd.f32 %v722_v26, %v672_v33  ;;  %v1670_v23 = vadd.f32 %v723_v19, %v673_v44 }
 0x170   : > { %v1673_v29 = vadd.f32 %v780_v27, %v1591_v0  ;;  %v1676_v18 = vadd.f32 %v781_v3, %v1593_v2  ;;  %v749_v0 = vsel %vm746_vm7, %v739_v54, %v1572_v7  ;;  %v752_v2 = vsel %vm746_vm7, %v1572_v7, %v739_v54 }
 0x171   : > { %v764_v37 = vmul.f32 %v1652_v11, %v749_v0  ;;  %v765_v7 = vmul.f32 %v1654_v57, %v752_v2 }
 0x173   : > { %v782_v49 = vmul.f32 %v1637_v41, %v764_v37  ;;  %v783_v21 = vmul.f32 %v1637_v41, %v765_v7 }
 0x174   : > { %v1678_v30 = vpop.permute.xlu1 %734  ;;  %v1680_v22 = vpop.permute.xlu2 %790 }
 0x175   : > { %v1688_v17 = vpop.permute.xlu0 %796  ;;  %v788_v61 = vadd.f32 %v782_v49, %v732_v32  ;;  %v747_v9 = vsel %vm746_vm7, %v1678_v30, %v1629_v10  ;;  %v750_v47 = vsel %vm746_vm7, %v1629_v10, %v1678_v30 }
 0x176   : > { %v760_v49 = vmul.f32 %v1652_v11, %v747_v9 }
 0x17c   : > { %v793_v42 = vpop.permute.xlu1 %792  ;;  %v855_v59 = vpop.permute.xlu2 %854 }
 0x17d   : > { %v768_v20 = vpop.permute.xlu0 %767  ;;  %v804_v52 = vsel %vm802_vm8, %v793_v42, %v1647_v36  ;;  %v807_v27 = vsel %vm802_vm8, %v1647_v36, %v793_v42 }
 0x17e   : > { %v818_v63 = vmul.f32 %v1708_v12, %v804_v52  ;;  %v819_v0 = vmul.f32 %v1710_v14, %v807_v27 }
 0x184   : > { %v857_v51 = vpop.permute.xlu1 %856  ;;  %v888_v8 = vpop.permute.xlu2 %887 }
 0x185   : > { %v861_v40 = vsel %vm858_vm9, %v851_v28, %v857_v51  ;;  %v864_v38 = vsel %vm858_vm9, %v857_v51, %v851_v28  ;;  %v789_v28 = vadd.f32 %v783_v21, %v733_v60  ;;  %v847_v19 = vpop.permute.xlu0 %846  ;;  %v761_v21 = vmul.f32 %v1654_v57, %v750_v47 }
 0x186   : > { %v876_v53 = vmul.f32 %v1722_v34, %v861_v40  ;;  %v877_v16 = vmul.f32 %v1724_v58, %v864_v38 }
 0x188   : > { %v894_v56 = vmul.f32 %v888_v8, %v876_v53  ;;  %v895_v46 = vmul.f32 %v888_v8, %v877_v16  ;;  %v779_v53 = vmul.f32 %v768_v20, %v761_v21 }
 0x18a   : > { %v785_v57 = vadd.f32 %v779_v53, %v1670_v23 }
 0x18c   : > { %v832_v25 = vpop.permute.xlu1 %831 }
 0x18d   : > { %v838_v43 = vmul.f32 %v832_v25, %v820_v62  ;;  %v839_v48 = vmul.f32 %v832_v25, %v821_v55  ;;  %v884_v31 = vpop.permute.xlu0 %883  ;;  %v824_v10 = vpop.permute.xlu2 %823  ;;  %v778_v55 = vmul.f32 %v768_v20, %v760_v49 }
 0x18f   : > { %v844_v41 = vadd.f32 %v838_v43, %v788_v61  ;;  %v845_v6 = vadd.f32 %v839_v48, %v789_v28  ;;  %v784_v11 = vadd.f32 %v778_v55, %v1668_v4  ;;  %v908_v4 = vld [vmem:[%s1801_s6] sm:$0xf] }
 0x191   : > { %v900_v54 = vadd.f32 %v894_v56, %v844_v41  ;;  %v901_v33 = vadd.f32 %v895_v46, %v845_v6  ;;  %v961_v56 = vld.sshfl [vmem:[#allocation1 + $0x8] sm:$0xff pattern:$0x75316420]  ;;  %v960_v6 = vld.sshfl [vmem:[#allocation1] sm:$0xff pattern:$0x75316420] }
 0x193   : > { %v906_v44 = vmax.f32 %v900_v54, 0.0  ;;  %v907_v26 = vmax.f32 %v901_v33, 0.0 }
 0x194   : > { %v849_v45 = vpop.permute.xlu1 %848 }
 0x195   : > { %932 = vmatpush.msra.mxu2 %v906_v44  ;;  %952 = vmatpush.msra.mxu3 %v907_v26  ;;  %v860_v3 = vsel %vm858_vm9, %v849_v45, %v855_v59  ;;  %v863_v39 = vsel %vm858_vm9, %v855_v59, %v849_v45 }
 0x196   : > { %v874_v2 = vmul.f32 %v1722_v34, %v860_v3  ;;  %v875_v13 = vmul.f32 %v1724_v58, %v863_v39 }
 0x198   : > { %v892_v37 = vmul.f32 %v884_v31, %v874_v2  ;;  %v893_v36 = vmul.f32 %v884_v31, %v875_v13 }
 0x19c   : > { %v828_v50 = vpop.permute.xlu1 %827 }
 0x19d   : > { %v836_v1 = vmul.f32 %v828_v50, %v818_v63  ;;  %v837_v51 = vmul.f32 %v828_v50, %v819_v0 }
 0x19f   : > { %v842_v42 = vadd.f32 %v836_v1, %v1673_v29  ;;  %v843_v7 = vadd.f32 %v837_v51, %v1676_v18  ;;  %v803_v29 = vsel %vm802_vm8, %v1680_v22, %v1688_v17  ;;  %v806_v18 = vsel %vm802_vm8, %v1688_v17, %v1680_v22 }
 0x1a0   : > { %v816_v30 = vmul.f32 %v1708_v12, %v803_v29  ;;  %v817_v62 = vmul.f32 %v1710_v14, %v806_v18 }
 0x1a1   : > { %v898_v15 = vadd.f32 %v892_v37, %v842_v42  ;;  %v899_v59 = vadd.f32 %v893_v36, %v843_v7 }
 0x1a2   : > { %v834_v17 = vmul.f32 %v824_v10, %v816_v30  ;;  %v835_v32 = vmul.f32 %v824_v10, %v817_v62 }
 0x1a3   : > { %v904_v35 = vmax.f32 %v898_v15, 0.0  ;;  %v905_v40 = vmax.f32 %v899_v59, 0.0 }
 0x1a4   : > { %v853_v38 = vpop.permute.xlu1 %852  ;;  %v840_v14 = vadd.f32 %v834_v17, %v784_v11  ;;  %v841_v43 = vadd.f32 %v835_v32, %v785_v57 }
 0x1a5   : > { %933 = vmatpush.msra.mxu2 %v904_v35  ;;  %953 = vmatpush.msra.mxu3 %v905_v40  ;;  %v859_v16 = vsel %vm858_vm9, %v847_v19, %v853_v38  ;;  %v862_v22 = vsel %vm858_vm9, %v853_v38, %v847_v19 }
 0x1a6   : > { %v872_v60 = vmul.f32 %v1722_v34, %v859_v16  ;;  %v873_v12 = vmul.f32 %v1724_v58, %v862_v22 }
 0x1ac   : > { %v880_v25 = vpop.permute.xlu1 %879 }
 0x1ad   : > { %v890_v20 = vmul.f32 %v880_v25, %v872_v60  ;;  %v891_v48 = vmul.f32 %v880_v25, %v873_v12 }
 0x1af   : > { %v896_v61 = vadd.f32 %v890_v20, %v840_v14  ;;  %v897_v28 = vadd.f32 %v891_v48, %v841_v43 }
 0x1b1   : > { %v902_v8 = vmax.f32 %v896_v61, 0.0  ;;  %v903_v5 = vmax.f32 %v897_v28, 0.0 }
 0x1b3   : > { %934 = vmatpush.msra.mxu2 %v902_v8  ;;  %954 = vmatpush.msra.mxu3 %v903_v5 }
 0x1b4   : > { %1051 = vmatmul.msk.f32.vlgmr.msra.gmra.mxu2 %vm915_vm10, %v908_v4  ;;  %1052 = vmatmul.msk.f32.vlgmr.msra.gmra.mxu3 %vm915_vm10, %v908_v4 }
 0x1c5   : > { %v913_v23 = vpop.permute.xlu2 %912 }
 0x237   : > { %v936_v34 = vpop.f32.mrf.mxu2  ;;  %v956_v58 = vpop.f32.mrf.mxu3 }
 0x238   : > { %v937_v46 = vadd.f32 %v936_v34, %v913_v23  ;;  %v957_v41 = vadd.f32 %v956_v58, %v913_v23 }
 0x23a   : > { %v965_v54 = vadd.f32 %v961_v56, %v957_v41  ;;  %v964_v33 = vadd.f32 %v960_v6, %v937_v46 }
 0x23c   : > { %v968_v44 = vrot.slane %v965_v54, 4 }
 0x23e   : > { %v969_v26 = vsel %vm342_vm0, %v964_v33, %v968_v44 }
 0x23f   : > { %971 = vst [vmem:[%s305_s29] sm:$0xff] %v969_v26 }
 0x240 PF: > { %s18_s27 = sadd.s32 1, %s1111_s27  }
 0x241   : > { %p15_p4 = scmp.ge.s32.totalorder %s18_s27, 4  }
 0x243   :  { %17 = sbr.rel (!%p15_p4) target bundleno = 1 (0x1), region = 89 }

</bundles_post_ra>
